<compile_context>
chip_gen: v5e
topology: v5e:2x2
jax: 0.10.0
libtpu: 0.0.40
codegen_flags: <defaults>
</compile_context>

<pallas_src>
import jax
import jax.numpy as jnp
from jax.experimental import pallas as pl
from jax.experimental.pallas import tpu as pltpu

LN_EPS = 1e-5  # torch.nn.LayerNorm default


def _cdiv(a, b):
    return -(-a // b)


def _round_up(a, m):
    return _cdiv(a, m) * m


def _prelu(x, a):
    return jnp.where(x >= 0, x, a * x)


def position_learner_kernel(
    prelu_ref,                 # scalar-prefetch (SMEM): [a1, a2]
    x_ref,
    w_in_ref, b_in_ref,
    w1_ref, b1_ref,
    ln_g_ref, ln_b_ref,
    w2_ref, b2_ref,
    w_out_ref, b_out_ref,
    o_ref,
):
    x = x_ref[...].astype(jnp.float32)

    # in_proj
    h = jnp.dot(x, w_in_ref[...], preferred_element_type=jnp.float32) + b_in_ref[...]

    # res_mlp: Linear1 -> LayerNorm -> PReLU -> Linear2, plus residual
    y = jnp.dot(h, w1_ref[...], preferred_element_type=jnp.float32) + b1_ref[...]
    mu = jnp.mean(y, axis=-1, keepdims=True)
    var = jnp.mean((y - mu) * (y - mu), axis=-1, keepdims=True)
    y = (y - mu) * jax.lax.rsqrt(var + LN_EPS) * ln_g_ref[...] + ln_b_ref[...]
    y = _prelu(y, prelu_ref[0])
    y = jnp.dot(y, w2_ref[...], preferred_element_type=jnp.float32) + b2_ref[...]
    h = h + y

    # out_proj + final PReLU (w_out/b_out are zero-padded to lane-dense width;
    # padded columns stay exactly 0 through bias add and PReLU).
    out = jnp.dot(h, w_out_ref[...], preferred_element_type=jnp.float32) + b_out_ref[...]
    out = _prelu(out, prelu_ref[1])

    o_ref[...] = out.astype(o_ref.dtype)


def position_learner(x, params, *, tm_max=1024, lane_dense_out=True):
    """x: (N, in_dim) float32.  params: dict of weights (see init_params)."""
    N, in_dim = x.shape
    hidden = params["w_in"].shape[1]
    out_dim = params["w_out"].shape[1]

    # ---- row tile selection -------------------------------------------------
    # Large tile (amortize per-step overhead), multiple of 8 (sublane rule),
    # and keep the grid length >= 2 when N allows so a v7x megacore can split
    # the "parallel" axis across both TensorCores.
    if N >= 16:
        n_steps = max(2, _cdiv(N, tm_max))
    else:
        n_steps = 1
    tm = _round_up(_cdiv(N, n_steps), 8)
    n_pad = n_steps * tm
    x_pad = x if n_pad == N else jnp.pad(x, ((0, n_pad - N), (0, 0)))

    # ---- lane-dense output --------------------------------------------------
    out_pad = _round_up(out_dim, 128) if lane_dense_out else out_dim
    w_out, b_out = params["w_out"], params["b_out"]
    if out_pad != out_dim:
        w_out = jnp.pad(w_out, ((0, 0), (0, out_pad - out_dim)))
        b_out = jnp.pad(b_out, ((0, 0), (0, out_pad - out_dim)))

    # PReLU scalars go through scalar prefetch -> SMEM (no padded VMEM tile,
    # no per-step DMA, no vreg lane-extract).
    prelu_scalars = jnp.stack(
        [params["a1"].reshape(()), params["a2"].reshape(())]
    ).astype(jnp.float32)

    # Weight/bias blocks are grid-invariant (constant index_map); at these
    # sizes double-buffering them is harmless, so no pipeline_mode override.
    full2d = lambda shape: pl.BlockSpec(shape, lambda i, pf: (0, 0))

    grid_spec = pltpu.PrefetchScalarGridSpec(
        num_scalar_prefetch=1,
        grid=(n_steps,),
        in_specs=[
            pl.BlockSpec((tm, in_dim), lambda i, pf: (i, 0)),   # x tile
            full2d((in_dim, hidden)),                            # w_in
            full2d((1, hidden)),                                 # b_in
            full2d((hidden, hidden)),                            # w1
            full2d((1, hidden)),                                 # b1
            full2d((1, hidden)),                                 # ln gamma
            full2d((1, hidden)),                                 # ln beta
            full2d((hidden, hidden)),                            # w2
            full2d((1, hidden)),                                 # b2
            full2d((hidden, out_pad)),                           # w_out (padded)
            full2d((1, out_pad)),                                # b_out (padded)
        ],
        out_specs=pl.BlockSpec((tm, out_pad), lambda i, pf: (i, 0)),
    )

    out = pl.pallas_call(
        position_learner_kernel,
        out_shape=jax.ShapeDtypeStruct((n_pad, out_pad), x.dtype),
        grid_spec=grid_spec,
        compiler_params=pltpu.CompilerParams(
            dimension_semantics=("parallel",)
        ),
    )(
        prelu_scalars,
        x_pad,
        params["w_in"], params["b_in"],
        params["w1"], params["b1"],
        params["ln_g"], params["ln_b"],
        params["w2"], params["b2"],
        w_out, b_out,
    )
    return out[:N, :out_dim]


def init_params(key, in_dim, hidden, out_dim):
    """Deterministic synthetic init (shapes match the PyTorch module)."""
    ks = jax.random.split(key, 8)
    u = lambda k, shape, bound: jax.random.uniform(
        k, shape, jnp.float32, minval=-bound, maxval=bound
    )
    return {
        # nn.Linear(in_dim, hidden)
        "w_in": u(ks[0], (in_dim, hidden), 1.0 / (in_dim ** 0.5)),
        "b_in": u(ks[1], (1, hidden), 1.0 / (in_dim ** 0.5)),
        # nn.Linear(hidden, hidden)
        "w1": u(ks[2], (hidden, hidden), 1.0 / (hidden ** 0.5)),
        "b1": u(ks[3], (1, hidden), 1.0 / (hidden ** 0.5)),
        # nn.LayerNorm(hidden) default affine init
        "ln_g": jnp.ones((1, hidden), jnp.float32),
        "ln_b": jnp.zeros((1, hidden), jnp.float32),
        # nn.PReLU() default: single scalar 0.25
        "a1": jnp.full((1, 1), 0.25, jnp.float32),
        # nn.Linear(hidden, hidden)
        "w2": u(ks[4], (hidden, hidden), 1.0 / (hidden ** 0.5)),
        "b2": u(ks[5], (1, hidden), 1.0 / (hidden ** 0.5)),
        # nn.Linear(hidden, out_dim)
        "w_out": u(ks[6], (hidden, out_dim), 1.0 / (hidden ** 0.5)),
        "b_out": u(ks[7], (1, out_dim), 1.0 / (hidden ** 0.5)),
        # self.act = nn.PReLU()
        "a2": jnp.full((1, 1), 0.25, jnp.float32),
    }


def position_learner_ref(x, p):
    """Pure-JAX reference mirroring the PyTorch forward."""
    h = x @ p["w_in"] + p["b_in"]
    y = h @ p["w1"] + p["b1"]
    mu = jnp.mean(y, axis=-1, keepdims=True)
    var = jnp.mean((y - mu) ** 2, axis=-1, keepdims=True)
    y = (y - mu) / jnp.sqrt(var + LN_EPS) * p["ln_g"] + p["ln_b"]
    y = jnp.where(y >= 0, y, p["a1"][0, 0] * y)
    y = y @ p["w2"] + p["b2"]
    h = h + y
    out = h @ p["w_out"] + p["b_out"]
    return jnp.where(out >= 0, out, p["a2"][0, 0] * out)


if __name__ == "__main__":
    key = jax.random.PRNGKey(0)
    k_x, k_p = jax.random.split(key)

    N, in_dim, hidden, out_dim = 64, 16, 32, 16
    x = jax.random.normal(k_x, (N, in_dim), jnp.float32)
    params = init_params(k_p, in_dim, hidden, out_dim)

    out = position_learner(x, params)
    out = jax.block_until_ready(out)

    ref = position_learner_ref(x, params)
    assert out.shape == (N, out_dim)
    assert jnp.allclose(out, ref, atol=1e-4, rtol=1e-4), "mismatch vs reference"

    print("KERNEL_OK")
</pallas_src>

<mosaic_0001>
module attributes {stable_mosaic.version = 11 : i64} {
  func.func @position_learner_kernel(%arg0: i32, %arg1: memref<2xf32, #tpu.memory_space<smem>>, %arg2: memref<32x16xf32, #tpu.memory_space<vmem>>, %arg3: memref<16x32xf32, #tpu.memory_space<vmem>>, %arg4: memref<1x32xf32, #tpu.memory_space<vmem>>, %arg5: memref<32x32xf32, #tpu.memory_space<vmem>>, %arg6: memref<1x32xf32, #tpu.memory_space<vmem>>, %arg7: memref<1x32xf32, #tpu.memory_space<vmem>>, %arg8: memref<1x32xf32, #tpu.memory_space<vmem>>, %arg9: memref<32x32xf32, #tpu.memory_space<vmem>>, %arg10: memref<1x32xf32, #tpu.memory_space<vmem>>, %arg11: memref<32x128xf32, #tpu.memory_space<vmem>>, %arg12: memref<1x128xf32, #tpu.memory_space<vmem>>, %arg13: memref<32x128xf32, #tpu.memory_space<vmem>>) attributes {dimension_semantics = [#tpu.dimension_semantics<parallel>], iteration_bounds = array<i64: 2>, scalar_prefetch = 1 : i64, scratch_operands = 0 : i64, tpu.core_type = #tpu.core_type<tc>, window_params = [{transform_indices = @transform_0, window_bounds = array<i64: 32, 16>}, {pipeline_mode = #tpu.pipeline_mode<synchronous>, transform_indices = @transform_1, window_bounds = array<i64: 16, 32>}, {pipeline_mode = #tpu.pipeline_mode<synchronous>, transform_indices = @transform_2, window_bounds = array<i64: 1, 32>}, {pipeline_mode = #tpu.pipeline_mode<synchronous>, transform_indices = @transform_3, window_bounds = array<i64: 32, 32>}, {pipeline_mode = #tpu.pipeline_mode<synchronous>, transform_indices = @transform_4, window_bounds = array<i64: 1, 32>}, {pipeline_mode = #tpu.pipeline_mode<synchronous>, transform_indices = @transform_5, window_bounds = array<i64: 1, 32>}, {pipeline_mode = #tpu.pipeline_mode<synchronous>, transform_indices = @transform_6, window_bounds = array<i64: 1, 32>}, {pipeline_mode = #tpu.pipeline_mode<synchronous>, transform_indices = @transform_7, window_bounds = array<i64: 32, 32>}, {pipeline_mode = #tpu.pipeline_mode<synchronous>, transform_indices = @transform_8, window_bounds = array<i64: 1, 32>}, {pipeline_mode = #tpu.pipeline_mode<synchronous>, transform_indices = @transform_9, window_bounds = array<i64: 32, 128>}, {pipeline_mode = #tpu.pipeline_mode<synchronous>, transform_indices = @transform_10, window_bounds = array<i64: 1, 128>}, {transform_indices = @transform_11, window_bounds = array<i64: 32, 128>}]} {
    %c0 = arith.constant 0 : index
    %c0_0 = arith.constant 0 : index
    %0 = vector.load %arg2[%c0, %c0_0] : memref<32x16xf32, #tpu.memory_space<vmem>>, vector<32x16xf32>
    %c0_1 = arith.constant 0 : index
    %c0_2 = arith.constant 0 : index
    %1 = vector.load %arg3[%c0_1, %c0_2] : memref<16x32xf32, #tpu.memory_space<vmem>>, vector<16x32xf32>
    %cst = arith.constant dense<0.000000e+00> : vector<32x32xf32>
    %2 = tpu.matmul %0, %1, %cst {dimension_numbers = #tpu.dot_dimension_numbers<[1], [0], [0], [1], [0, 0, 1, 1], [], []>} : vector<32x16xf32>, vector<16x32xf32>, vector<32x32xf32> -> vector<32x32xf32>
    %c0_3 = arith.constant 0 : index
    %c0_4 = arith.constant 0 : index
    %3 = vector.load %arg4[%c0_3, %c0_4] : memref<1x32xf32, #tpu.memory_space<vmem>>, vector<1x32xf32>
    %4 = vector.broadcast %3 : vector<1x32xf32> to vector<32x32xf32>
    %5 = arith.addf %2, %4 : vector<32x32xf32>
    %c0_5 = arith.constant 0 : index
    %c0_6 = arith.constant 0 : index
    %6 = vector.load %arg5[%c0_5, %c0_6] : memref<32x32xf32, #tpu.memory_space<vmem>>, vector<32x32xf32>
    %cst_7 = arith.constant dense<0.000000e+00> : vector<32x32xf32>
    %7 = tpu.matmul %5, %6, %cst_7 {dimension_numbers = #tpu.dot_dimension_numbers<[1], [0], [0], [1], [0, 0, 1, 1], [], []>} : vector<32x32xf32>, vector<32x32xf32>, vector<32x32xf32> -> vector<32x32xf32>
    %c0_8 = arith.constant 0 : index
    %c0_9 = arith.constant 0 : index
    %8 = vector.load %arg6[%c0_8, %c0_9] : memref<1x32xf32, #tpu.memory_space<vmem>>, vector<1x32xf32>
    %9 = vector.broadcast %8 : vector<1x32xf32> to vector<32x32xf32>
    %10 = arith.addf %7, %9 : vector<32x32xf32>
    %cst_10 = arith.constant dense<0.000000e+00> : vector<32xf32>
    %11 = vector.multi_reduction <add>, %10, %cst_10 [1] : vector<32x32xf32> to vector<32xf32>
    %12 = vector.shape_cast %11 : vector<32xf32> to vector<32x1xf32>
    %cst_11 = arith.constant 3.200000e+01 : f32
    %13 = vector.broadcast %cst_11 : f32 to vector<32x1xf32>
    %14 = arith.divf %12, %13 : vector<32x1xf32>
    %15 = vector.broadcast %14 : vector<32x1xf32> to vector<32x32xf32>
    %16 = arith.subf %10, %15 : vector<32x32xf32>
    %17 = vector.broadcast %14 : vector<32x1xf32> to vector<32x32xf32>
    %18 = arith.subf %10, %17 : vector<32x32xf32>
    %19 = arith.mulf %16, %18 : vector<32x32xf32>
    %cst_12 = arith.constant dense<0.000000e+00> : vector<32xf32>
    %20 = vector.multi_reduction <add>, %19, %cst_12 [1] : vector<32x32xf32> to vector<32xf32>
    %21 = vector.shape_cast %20 : vector<32xf32> to vector<32x1xf32>
    %cst_13 = arith.constant 3.200000e+01 : f32
    %22 = vector.broadcast %cst_13 : f32 to vector<32x1xf32>
    %23 = arith.divf %21, %22 : vector<32x1xf32>
    %24 = vector.broadcast %14 : vector<32x1xf32> to vector<32x32xf32>
    %25 = arith.subf %10, %24 : vector<32x32xf32>
    %cst_14 = arith.constant 9.99999974E-6 : f32
    %26 = vector.broadcast %cst_14 : f32 to vector<32x1xf32>
    %27 = arith.addf %23, %26 : vector<32x1xf32>
    %28 = math.rsqrt %27 : vector<32x1xf32>
    %29 = vector.broadcast %28 : vector<32x1xf32> to vector<32x32xf32>
    %30 = arith.mulf %25, %29 : vector<32x32xf32>
    %c0_15 = arith.constant 0 : index
    %c0_16 = arith.constant 0 : index
    %31 = vector.load %arg7[%c0_15, %c0_16] : memref<1x32xf32, #tpu.memory_space<vmem>>, vector<1x32xf32>
    %32 = vector.broadcast %31 : vector<1x32xf32> to vector<32x32xf32>
    %33 = arith.mulf %30, %32 : vector<32x32xf32>
    %c0_17 = arith.constant 0 : index
    %c0_18 = arith.constant 0 : index
    %34 = vector.load %arg8[%c0_17, %c0_18] : memref<1x32xf32, #tpu.memory_space<vmem>>, vector<1x32xf32>
    %35 = vector.broadcast %34 : vector<1x32xf32> to vector<32x32xf32>
    %36 = arith.addf %33, %35 : vector<32x32xf32>
    %c0_19 = arith.constant 0 : index
    %37 = memref.load %arg1[%c0_19] : memref<2xf32, #tpu.memory_space<smem>>
    %cst_20 = arith.constant 0.000000e+00 : f32
    %38 = vector.broadcast %cst_20 : f32 to vector<32x32xf32>
    %39 = arith.cmpf oge, %36, %38 : vector<32x32xf32>
    %40 = vector.broadcast %37 : f32 to vector<32x32xf32>
    %41 = arith.mulf %40, %36 : vector<32x32xf32>
    %42 = arith.select %39, %36, %41 : vector<32x32xi1>, vector<32x32xf32>
    %c0_21 = arith.constant 0 : index
    %c0_22 = arith.constant 0 : index
    %43 = vector.load %arg9[%c0_21, %c0_22] : memref<32x32xf32, #tpu.memory_space<vmem>>, vector<32x32xf32>
    %cst_23 = arith.constant dense<0.000000e+00> : vector<32x32xf32>
    %44 = tpu.matmul %42, %43, %cst_23 {dimension_numbers = #tpu.dot_dimension_numbers<[1], [0], [0], [1], [0, 0, 1, 1], [], []>} : vector<32x32xf32>, vector<32x32xf32>, vector<32x32xf32> -> vector<32x32xf32>
    %c0_24 = arith.constant 0 : index
    %c0_25 = arith.constant 0 : index
    %45 = vector.load %arg10[%c0_24, %c0_25] : memref<1x32xf32, #tpu.memory_space<vmem>>, vector<1x32xf32>
    %46 = vector.broadcast %45 : vector<1x32xf32> to vector<32x32xf32>
    %47 = arith.addf %44, %46 : vector<32x32xf32>
    %48 = arith.addf %5, %47 : vector<32x32xf32>
    %c0_26 = arith.constant 0 : index
    %c0_27 = arith.constant 0 : index
    %49 = vector.load %arg11[%c0_26, %c0_27] : memref<32x128xf32, #tpu.memory_space<vmem>>, vector<32x128xf32>
    %cst_28 = arith.constant dense<0.000000e+00> : vector<32x128xf32>
    %50 = tpu.matmul %48, %49, %cst_28 {dimension_numbers = #tpu.dot_dimension_numbers<[1], [0], [0], [1], [0, 0, 1, 1], [], []>} : vector<32x32xf32>, vector<32x128xf32>, vector<32x128xf32> -> vector<32x128xf32>
    %c0_29 = arith.constant 0 : index
    %c0_30 = arith.constant 0 : index
    %51 = vector.load %arg12[%c0_29, %c0_30] : memref<1x128xf32, #tpu.memory_space<vmem>>, vector<1x128xf32>
    %52 = vector.broadcast %51 : vector<1x128xf32> to vector<32x128xf32>
    %53 = arith.addf %50, %52 : vector<32x128xf32>
    %c1 = arith.constant 1 : index
    %54 = memref.load %arg1[%c1] : memref<2xf32, #tpu.memory_space<smem>>
    %cst_31 = arith.constant 0.000000e+00 : f32
    %55 = vector.broadcast %cst_31 : f32 to vector<32x128xf32>
    %56 = arith.cmpf oge, %53, %55 : vector<32x128xf32>
    %57 = vector.broadcast %54 : f32 to vector<32x128xf32>
    %58 = arith.mulf %57, %53 : vector<32x128xf32>
    %59 = arith.select %56, %53, %58 : vector<32x128xi1>, vector<32x128xf32>
    %c0_32 = arith.constant 0 : index
    %c0_33 = arith.constant 0 : index
    %60 = vector.load %arg13[%c0_32, %c0_33] : memref<32x128xf32, #tpu.memory_space<vmem>>, vector<32x128xf32>
    tpu.vector_store %arg13[%c0_32, %c0_33], %59 {strides = array<i32>} : memref<32x128xf32, #tpu.memory_space<vmem>>, vector<32x128xf32>,
    return
  }
  func.func @transform_0(%arg0: i32, %arg1: memref<2xf32, #tpu.memory_space<smem>>) -> (i32, i32) {
    %c0_i32 = arith.constant 0 : i32
    %c0_i32_0 = arith.constant 0 : i32
    return %arg0, %c0_i32 : i32, i32
  }
  func.func @transform_1(%arg0: i32, %arg1: memref<2xf32, #tpu.memory_space<smem>>) -> (i32, i32) {
    %c0_i32 = arith.constant 0 : i32
    %c0_i32_0 = arith.constant 0 : i32
    %c0_i32_1 = arith.constant 0 : i32
    return %c0_i32, %c0_i32_0 : i32, i32
  }
  func.func @transform_2(%arg0: i32, %arg1: memref<2xf32, #tpu.memory_space<smem>>) -> (i32, i32) {
    %c0_i32 = arith.constant 0 : i32
    %c0_i32_0 = arith.constant 0 : i32
    %c0_i32_1 = arith.constant 0 : i32
    return %c0_i32, %c0_i32_0 : i32, i32
  }
  func.func @transform_3(%arg0: i32, %arg1: memref<2xf32, #tpu.memory_space<smem>>) -> (i32, i32) {
    %c0_i32 = arith.constant 0 : i32
    %c0_i32_0 = arith.constant 0 : i32
    %c0_i32_1 = arith.constant 0 : i32
    return %c0_i32, %c0_i32_0 : i32, i32
  }
  func.func @transform_4(%arg0: i32, %arg1: memref<2xf32, #tpu.memory_space<smem>>) -> (i32, i32) {
    %c0_i32 = arith.constant 0 : i32
    %c0_i32_0 = arith.constant 0 : i32
    %c0_i32_1 = arith.constant 0 : i32
    return %c0_i32, %c0_i32_0 : i32, i32
  }
  func.func @transform_5(%arg0: i32, %arg1: memref<2xf32, #tpu.memory_space<smem>>) -> (i32, i32) {
    %c0_i32 = arith.constant 0 : i32
    %c0_i32_0 = arith.constant 0 : i32
    %c0_i32_1 = arith.constant 0 : i32
    return %c0_i32, %c0_i32_0 : i32, i32
  }
  func.func @transform_6(%arg0: i32, %arg1: memref<2xf32, #tpu.memory_space<smem>>) -> (i32, i32) {
    %c0_i32 = arith.constant 0 : i32
    %c0_i32_0 = arith.constant 0 : i32
    %c0_i32_1 = arith.constant 0 : i32
    return %c0_i32, %c0_i32_0 : i32, i32
  }
  func.func @transform_7(%arg0: i32, %arg1: memref<2xf32, #tpu.memory_space<smem>>) -> (i32, i32) {
    %c0_i32 = arith.constant 0 : i32
    %c0_i32_0 = arith.constant 0 : i32
    %c0_i32_1 = arith.constant 0 : i32
    return %c0_i32, %c0_i32_0 : i32, i32
  }
  func.func @transform_8(%arg0: i32, %arg1: memref<2xf32, #tpu.memory_space<smem>>) -> (i32, i32) {
    %c0_i32 = arith.constant 0 : i32
    %c0_i32_0 = arith.constant 0 : i32
    %c0_i32_1 = arith.constant 0 : i32
    return %c0_i32, %c0_i32_0 : i32, i32
  }
  func.func @transform_9(%arg0: i32, %arg1: memref<2xf32, #tpu.memory_space<smem>>) -> (i32, i32) {
    %c0_i32 = arith.constant 0 : i32
    %c0_i32_0 = arith.constant 0 : i32
    %c0_i32_1 = arith.constant 0 : i32
    return %c0_i32, %c0_i32_0 : i32, i32
  }
  func.func @transform_10(%arg0: i32, %arg1: memref<2xf32, #tpu.memory_space<smem>>) -> (i32, i32) {
    %c0_i32 = arith.constant 0 : i32
    %c0_i32_0 = arith.constant 0 : i32
    %c0_i32_1 = arith.constant 0 : i32
    return %c0_i32, %c0_i32_0 : i32, i32
  }
  func.func @transform_11(%arg0: i32, %arg1: memref<2xf32, #tpu.memory_space<smem>>) -> (i32, i32) {
    %c0_i32 = arith.constant 0 : i32
    %c0_i32_0 = arith.constant 0 : i32
    return %arg0, %c0_i32 : i32, i32
  }
}

</mosaic_0001>

<bundles_post_ra>
// kernel: tpu_custom_call.1
= control target key start
LH: loop header
LB: loop body
LE: loop exit
PB: predicated region body
PF: predicated region fallthrough
CT: control target
= control target key end

     0   :  { %s1067_s24 = smov [#allocation3]   ;;  %s1349_s0 = inlined_call_operand.hbm [shape: f32[2], index: 0, kind: input, shape index: {}]   ;;  %s1350_s1 = inlined_call_operand.vmem [shape: f32[64,16], index: 1, kind: input, shape index: {}]   ;;  %s1351_s2 = inlined_call_operand.vmem [shape: f32[16,32], index: 2, kind: input, shape index: {}]   ;;  %s1352_s3 = inlined_call_operand.vmem [shape: f32[1,32], index: 3, kind: input, shape index: {}]   ;;  %s1353_s4 = inlined_call_operand.vmem [shape: f32[32,32], index: 4, kind: input, shape index: {}]   ;;  %s1354_s5 = inlined_call_operand.vmem [shape: f32[1,32], index: 5, kind: input, shape index: {}]   ;;  %s1355_s6 = inlined_call_operand.vmem [shape: f32[1,32], index: 6, kind: input, shape index: {}]   ;;  %s1356_s7 = inlined_call_operand.vmem [shape: f32[1,32], index: 7, kind: input, shape index: {}]   ;;  %s1357_s8 = inlined_call_operand.vmem [shape: f32[32,32], index: 8, kind: input, shape index: {}]   ;;  %s1358_s9 = inlined_call_operand.vmem [shape: f32[1,32], index: 9, kind: input, shape index: {}]   ;;  %s1359_s10 = inlined_call_operand.hbm [shape: f32[32,128], index: 10, kind: input, shape index: {}]   ;;  %s1360_s11 = inlined_call_operand.vmem [shape: f32[1,128], index: 11, kind: input, shape index: {}]   ;;  %s1361_s12 = inlined_call_operand.hbm [shape: f32[64,128], index: 12, kind: output, shape index: {}]  }
   0x1   :  { %1362 = sst [smem:[#allocation12_spill]] %s1359_s10  ;;  %s18_s23 = sshll.u32 %s1349_s0, 4  ;;  %s19_s23 = int_to_ptr.hbm [resolvable:$true] %s18_s23 }
   0x2   :  { %21 = dma.hbm_to_smem %s19_s23, 16, %s1067_s24, [#allocation2] }
   0x3   :  { %1041 = dma.done.wait [#allocation2], 16 }
   0x4   :  { %1042 = vsyncadd [#allocation2], 4294967280 }
   0x5   :  { %24 = sfence }
   0x6   :  { %25 = vsyncpa [#allocation5], 0 }
   0x7   :  { %26 = vsyncpa [#allocation6], 0 }
   0x8   :  { %28 = vsyncpa [#allocation6 + $0x1], 0  ;;  %s1142_s25 = smov 0   ;;  %s1144_s26 = smov 0  }
   0x9   :  { %s1146_s27 = smov 0   ;;  %s1148_s28 = smov 0  }
   0xa LB: > { %s1163_s0 = sadd.s32 4294967295, %s1065_s28   ;;  %s851_s29 = sadd.s32 4294967294, %s1065_s28   ;;  %s1065_s28 = sphi %s1148_s28, %s1371_s28   ;;  %s1061_s27 = sphi %s1146_s27, %s1370_s27   ;;  %s1057_s26 = sphi %s1144_s26, %s1369_s26   ;;  %s1053_s25 = sphi %s1142_s25, %s1368_s25  }
   0xb   : > { %s1167_s30 = sadd.s32 1, %s1065_s28   ;;  %s277_s13 = sadd.s32 1, %s1061_s27 }
   0xc   : > { %s274_s14 = ssub.s32 %s1065_s28, %s1167_s30  ;;  %p287_p0 = scmp.ne.s32.totalorder %s1061_s27, %s1057_s26 }
   0xd   : > { %p275_p1 = scmp.eq.s32.totalorder %s274_s14, 0  ;;  %p288_p2 = scmp.eq.s32.totalorder %s1163_s0, 1 }
   0xe   : > { %p293_p3 = scmp.ne.s32.totalorder %s1057_s26, %s1053_s25  ;;  %p294_p4 = scmp.eq.s32.totalorder %s851_s29, 1 }
   0xf   : > { %s1178_s15 = scalar_select %p275_p1, %s1061_s27, %s277_s13  }
  0x10   : > { %p1180_p5 = por %p288_p2, %p287_p0  ;;  %p1184_p6 = por %p294_p4, %p293_p3 }
  0x11   : > { %1363 = sst [smem:[#allocation11_spill]] %s1178_s15  ;;  %p852_p7 = scmp.ge.s32.totalorder %s1065_s28, 1 }
  0x12   : > { %p301_p8 = scmp.lt.s32.totalorder %s1065_s28, 3  ;;  %p897_p9 = scmp.eq.s32.totalorder %s1163_s0, 0 }
  0x13   : > { %s1366_s10 = sld [smem:[#allocation12_spill]]  ;;  %s1068_s21 = smov [#allocation4]  }
  0x14   : > { %p302_p10 = pnand %p852_p7, %p301_p8  ;;  %s338_s22 = sshll.u32 %s1068_s21, 4  ;;  %s339_s22 = int_to_ptr.vmem [resolvable:$true] %s338_s22 }
  0x15   : > { %s1069_s23 = smov 128   ;;  %s1070_s24 = smov 8  }
  0x16   : > { %p889_p11 = pneg %p302_p10  ;;  %366 = sbr.rel (%p302_p10) target bundleno = 863 (0x35f), region = 64 }
  0x18   : > { %p890_p12 = pnand %p897_p9, %p889_p11 }
  0x19   : > { %s336_s20 = sshll.u32 %s1366_s10, 4  ;;  %s337_s20 = int_to_ptr.hbm [resolvable:$true] %s336_s20 }
  0x1a   : > { %892 = dma.hbm_to_vmem [thread:$0]  (!%p890_p12), %s337_s20, 512, %s339_s22, [#allocation5], %s1069_s23, %s1069_s23, %s1070_s24  }
  0x1b   : > { %1044 = dma.done.wait (%p897_p9), [#allocation5], 512  }
  0x1c   : > { %1046 = vsyncadd (%p897_p9), [#allocation5], 4294966784  ;;  %s858_s29 = sshll.u32 %s1163_s0, 2  ;;  %v419_v0 = vld [vmem:[%s1351_s2 + $0x8] sm:$0xff]  ;;  %v418_v1 = vld [vmem:[%s1351_s2] sm:$0xff]  ;;  %vm424_vm0 = vcmask 130048  }
  0x1d   : > { %p408_p13 = scmp.lt.s32.totalorder %s858_s29, 7  ;;  %451 = vmatpush.msra.mxu0 %v419_v0  ;;  %v469_v3 = vld [vmem:[%s1353_s4 + $0x18] sm:$0xff]  ;;  %v468_v4 = vld [vmem:[%s1353_s4 + $0x10] sm:$0xff]  ;;  %v467_v8 = vld [vmem:[%s1353_s4 + $0x8] sm:$0xff]  ;;  %vm474_vm1 = vcmask 261120   ;;  %v1071_v32 = vmov 32.0  }
  0x1e   : > { %499 = vmatpush.msra.mxu1 %v469_v3  ;;  %v466_v9 = vld [vmem:[%s1353_s4] sm:$0xff]  ;;  %945 = vrcp.f32 %v1071_v32  ;;  %v644_v59 = vld [vmem:[%s1357_s8 + $0x18] sm:$0xff]  ;;  %v643_v60 = vld [vmem:[%s1357_s8 + $0x10] sm:$0xff]  ;;  %s627_s15 = sld [smem:[#allocation3]]  ;;  %s404_s10 = sand.u32 1, %s1057_s26  }
  0x1f   : > { %s1373_s29 = smov (!%p408_p13, %s858_s29), 7  ;;  %452 = vmatpush.msra.mxu0 %v418_v1  ;;  %v939_v10 = vld [vmem:[%s1352_s3] ss:$0 sm:$0xff]  ;;  %673 = vmatpush.msra.mxu2 %v644_v59  ;;  %v642_v61 = vld [vmem:[%s1357_s8 + $0x8] sm:$0xff]  ;;  %s857_s18 = sshll.u32 %s404_s10, 5 }
  0x20   : > { %s859_s13 = sshll.u32 %s1373_s29, 3  ;;  %500 = vmatpush.msra.mxu1 %v468_v4  ;;  %v940_v19 = vld [vmem:[%s1354_s5] ss:$0 sm:$0xff]  ;;  %s876_s29 = sld [smem:[#allocation3 + $0x1]] }
  0x21   : > { %s411_s19 = scalar_lea.vmem %s1350_s1, %s859_s13  ;;  %674 = vmatpush.msra.mxu2 %v643_v60  ;;  %v641_v62 = vld [vmem:[%s1357_s8] sm:$0xff]  ;;  %s882_s21 = sshll.u32 %s1163_s0, 5 }
  0x22   : > { %v414_v2 = vld [vmem:[%s411_s19] sm:$0xff]  ;;  %v415_v5 = vld [vmem:[%s411_s19 + $0x8] sm:$0xff]  ;;  %v416_v6 = vld [vmem:[%s411_s19 + $0x10] sm:$0xff]  ;;  %501 = vmatpush.msra.mxu1 %v467_v8  ;;  %s773_s22 = scalar_lea.hbm %s1361_s12, %s882_s21  ;;  %s762_s0 = scalar_lea.sflag [#allocation6], %s404_s10 }
  0x23   : > { %860 = vmatmul.msk.f32.vlgmr.msra.gmra.mxu0 %vm424_vm0, %v414_v2  ;;  %v417_v7 = vld [vmem:[%s411_s19 + $0x18] sm:$0xff]  ;;  %675 = vmatpush.msra.mxu2 %v642_v61  ;;  %s776_s24 = sshll.u32 %s773_s22, 4  ;;  %s1017_s21 = scalar_lea.hbm %s1361_s12, 64  ;;  %s777_s24 = int_to_ptr.hbm [resolvable:$true] %s776_s24 }
  0x24   : > { %502 = vmatpush.msra.mxu1 %v466_v9  ;;  %v946_v33 = vpop.eup %945 }
  0x25   : > { %v529_v34 = vmul.f32 32.0, %v946_v33  ;;  %vm533_vm2 = vweird.f32 %v946_v33  ;;  %676 = vmatpush.msra.mxu2 %v641_v62 }
  0x27   : > { %v530_v35 = vsub.f32 1.0, %v529_v34 }
  0x29   : > { %v531_v36 = vmul.f32 %v946_v33, %v530_v35 }
  0x2b   : > { %861 = vmatmul.msk.f32.gmra.mxu0 %vm424_vm0, %v415_v5  ;;  %v532_v37 = vadd.f32 %v946_v33, %v531_v36 }
  0x2d   : > { %v1248_v38 = vsel %vm533_vm2, %v946_v33, %v532_v37 }
  0x33   : > { %862 = vmatmul.msk.f32.gmra.mxu0 %vm424_vm0, %v416_v6 }
  0x3b   : > { %863 = vmatmul.msk.f32.gmra.mxu0 %vm424_vm0, %v417_v7 }
  0xa0   : > { %v454_v11 = vpop.f32.mrf.mxu0 }
  0xa1   : > { %v1225_v12 = vadd.f32 %v939_v10, %v454_v11 }
  0xa3   : > { %864 = vmatmul.msk.f32.vlgmr.msra.gmra.mxu1 %vm474_vm1, %v1225_v12 }
  0xa8   : > { %v457_v13 = vpop.f32.mrf.mxu0 }
  0xa9   : > { %v1229_v14 = vadd.f32 %v939_v10, %v457_v13 }
  0xab   : > { %865 = vmatmul.msk.f32.gmra.mxu1 %vm474_vm1, %v1229_v14 }
  0xb0   : > { %v460_v15 = vpop.f32.mrf.mxu0 }
  0xb1   : > { %v1233_v16 = vadd.f32 %v939_v10, %v460_v15 }
  0xb3   : > { %866 = vmatmul.msk.f32.gmra.mxu1 %vm474_vm1, %v1233_v16 }
  0xb8   : > { %v463_v17 = vpop.f32.mrf.mxu0 }
  0xb9   : > { %v1237_v18 = vadd.f32 %v939_v10, %v463_v17 }
  0xbb   : > { %867 = vmatmul.msk.f32.gmra.mxu1 %vm474_vm1, %v1237_v18 }
 0x120   : > { %v504_v20 = vpop.f32.mrf.mxu1 }
 0x121   : > { %v505_v21 = vadd.f32 %v940_v19, %v504_v20  ;;  %v941_v20 = vld [vmem:[%s1355_s6] ss:$0 sm:$0xff] }
 0x123   : > { %v516_v22 = vsel %vm474_vm1, %v505_v21, 0.0 }
 0x124   : > { %517 = vadd.xlane.f32.xlu0 %v516_v22 }
 0x128   : > { %v507_v23 = vpop.f32.mrf.mxu1 }
 0x129   : > { %v508_v24 = vadd.f32 %v940_v19, %v507_v23 }
 0x12b   : > { %v519_v25 = vsel %vm474_vm1, %v508_v24, 0.0 }
 0x12c   : > { %520 = vadd.xlane.f32.xlu0 %v519_v25 }
 0x130   : > { %v510_v26 = vpop.f32.mrf.mxu1 }
 0x131   : > { %v511_v27 = vadd.f32 %v940_v19, %v510_v26 }
 0x133   : > { %v522_v28 = vsel %vm474_vm1, %v511_v27, 0.0 }
 0x134   : > { %523 = vadd.xlane.f32.xlu1 %v522_v28 }
 0x138   : > { %v513_v29 = vpop.f32.mrf.mxu1 }
 0x139   : > { %v514_v30 = vadd.f32 %v940_v19, %v513_v29 }
 0x13b   : > { %v525_v31 = vsel %vm474_vm1, %v514_v30, 0.0 }
 0x13c   : > { %526 = vadd.xlane.f32.xlu1 %v525_v31  ;;  %v632_v31 = vstv %s627_s15  ;;  %s406_s15 = scalar_lea.vmem [#allocation7], %s857_s18 }
 0x13d   : > { %s774_s23 = sshll.u32 %s406_s15, 4  ;;  %s775_s23 = int_to_ptr.vmem [resolvable:$true] %s774_s23 }
 0x197   : > { %v518_v39 = vpop.xlane.xlu0 %517 }
 0x198   : > { %v535_v40 = vmul.f32 %v1248_v38, %v518_v39 }
 0x19a   : > { %v539_v41 = vsub.f32 %v505_v21, %v535_v40 }
 0x19c   : > { %v543_v42 = vmul.f32 %v539_v41, %v539_v41 }
 0x19e   : > { %v547_v43 = vsel %vm474_vm1, %v543_v42, 0.0 }
 0x19f   : > { %548 = vadd.xlane.f32.xlu2 %v547_v43  ;;  %v521_v44 = vpop.xlane.xlu0 %520 }
 0x1a0   : > { %v536_v45 = vmul.f32 %v1248_v38, %v521_v44 }
 0x1a2   : > { %v1253_v46 = vsub.f32 %v508_v24, %v536_v45  ;;  %v942_v24 = vld [vmem:[%s1356_s7] ss:$0 sm:$0xff] }
 0x1a4   : > { %v544_v47 = vmul.f32 %v1253_v46, %v1253_v46 }
 0x1a6   : > { %v550_v48 = vsel %vm474_vm1, %v544_v47, 0.0 }
 0x1a7   : > { %v524_v49 = vpop.xlane.xlu1 %523  ;;  %551 = vadd.xlane.f32.xlu2 %v550_v48 }
 0x1a8   : > { %v537_v50 = vmul.f32 %v1248_v38, %v524_v49 }
 0x1aa   : > { %v1259_v51 = vsub.f32 %v511_v27, %v537_v50  ;;  %v697_v27 = vld [vmem:[#allocation4 + $0x18] sm:$0xff] }
 0x1ab   : > { %726 = vmatpush.msra.mxu3 %v697_v27 }
 0x1ac   : > { %v545_v52 = vmul.f32 %v1259_v51, %v1259_v51 }
 0x1ae   : > { %v553_v53 = vsel %vm474_vm1, %v545_v52, 0.0 }
 0x1af   : > { %v527_v54 = vpop.xlane.xlu1 %526  ;;  %554 = vadd.xlane.f32.xlu0 %v553_v53 }
 0x1b0   : > { %v538_v55 = vmul.f32 %v1248_v38, %v527_v54 }
 0x1b2   : > { %v1265_v56 = vsub.f32 %v514_v30, %v538_v55 }
 0x1b4   : > { %v546_v57 = vmul.f32 %v1265_v56, %v1265_v56 }
 0x1b6   : > { %v556_v58 = vsel %vm474_vm1, %v546_v57, 0.0 }
 0x1b7   : > { %557 = vadd.xlane.f32.xlu1 %v556_v58 }
 0x212   : > { %v549_v63 = vpop.xlane.xlu2 %548 }
 0x213   : > { %v559_v0 = vmul.f32 %v549_v63, %v1248_v38 }
 0x215   : > { %v563_v1 = vadd.f32 1e-05, %v559_v0 }
 0x217   : > { %947 = vrsqrt.f32 %v563_v1  ;;  %vm573_vm4 = vweird.f32 %v563_v1 }
 0x21a   : > { %v552_v2 = vpop.xlane.xlu2 %551 }
 0x21b   : > { %v560_v3 = vmul.f32 %v552_v2, %v1248_v38 }
 0x21d   : > { %v948_v4 = vpop.eup %947  ;;  %v564_v5 = vadd.f32 1e-05, %v560_v3 }
 0x21e   : > { %v568_v6 = vmul.f32 %v948_v4, %v563_v1  ;;  %vm574_vm3 = vweird.f32 %v948_v4 }
 0x21f   : > { %949 = vrsqrt.f32 %v564_v5  ;;  %vm575_vm5 = vmor %vm573_vm4, %vm574_vm3  ;;  %vm583_vm7 = vweird.f32 %v564_v5 }
 0x220   : > { %v569_v7 = vmul.f32 %v948_v4, %v568_v6  ;;  %v694_v6 = vld [vmem:[#allocation4] sm:$0xff] }
 0x222   : > { %v570_v8 = vmul.f32 0.5, %v569_v7  ;;  %v555_v9 = vpop.xlane.xlu0 %554 }
 0x223   : > { %v561_v10 = vmul.f32 %v555_v9, %v1248_v38 }
 0x224   : > { %v571_v11 = vsub.f32 1.5, %v570_v8 }
 0x225   : > { %v950_v13 = vpop.eup %949  ;;  %v565_v15 = vadd.f32 1e-05, %v561_v10 }
 0x226   : > { %v572_v17 = vmul.f32 %v948_v4, %v571_v11  ;;  %v578_v19 = vmul.f32 %v950_v13, %v564_v5  ;;  %vm584_vm6 = vweird.f32 %v950_v13  ;;  %v695_v5 = vld [vmem:[#allocation4 + $0x8] sm:$0xff] }
 0x227   : > { %951 = vrsqrt.f32 %v565_v15  ;;  %vm585_vm8 = vmor %vm583_vm7, %vm584_vm6  ;;  %vm593_vm11 = vweird.f32 %v565_v15 }
 0x228   : > { %v576_v21 = vsel %vm575_vm5, %v948_v4, %v572_v17  ;;  %v579_v22 = vmul.f32 %v950_v13, %v578_v19  ;;  %v696_v4 = vld [vmem:[#allocation4 + $0x10] sm:$0xff] }
 0x229   : > { %v607_v23 = vmul.f32 %v576_v21, %v539_v41  ;;  %727 = vmatpush.msra.mxu3 %v696_v4 }
 0x22a   : > { %v580_v25 = vmul.f32 0.5, %v579_v22  ;;  %v558_v26 = vpop.xlane.xlu1 %557 }
 0x22b   : > { %v562_v28 = vmul.f32 %v558_v26, %v1248_v38  ;;  %v615_v29 = vmul.f32 %v941_v20, %v607_v23  ;;  %728 = vmatpush.msra.mxu3 %v695_v5  ;;  %v748_v23 = vstv %s876_s29  ;;  %s1011_s29 = sshra.s32 %s777_s24, 4  ;;  %s1012_s29 = int_to_ptr.hbm [resolvable:$true] %s1011_s29 }
 0x22c   : > { %v581_v30 = vsub.f32 1.5, %v580_v25  ;;  %s1013_s13 = scalar_lea.hbm %s1012_s29, 32  ;;  %p1018_p3 = scmp.lt.s32.totalorder %s1012_s29, %s1361_s12 }
 0x22d   : > { %v952_v32 = vpop.eup %951  ;;  %v566_v33 = vadd.f32 1e-05, %v562_v28  ;;  %v623_v34 = vadd.f32 %v942_v24, %v615_v29  ;;  %729 = vmatpush.msra.mxu3 %v694_v6  ;;  %p1014_p0 = scmp.ne.s32.totalorder %s1012_s29, %s1013_s13  ;;  %p1019_p4 = scmp.lt.s32.totalorder %s1017_s21, %s1013_s13 }
 0x22e   : > { %v582_v35 = vmul.f32 %v950_v13, %v581_v30  ;;  %v588_v36 = vmul.f32 %v952_v32, %v565_v15  ;;  %vm594_vm10 = vweird.f32 %v952_v32 }
 0x22f   : > { %953 = vrsqrt.f32 %v566_v33  ;;  %vm628_vm9 = vcmp.ge.f32.partialorder %v623_v34, 0.0  ;;  %v633_v37 = vmul.f32 %v632_v31, %v623_v34  ;;  %vm595_vm12 = vmor %vm593_vm11, %vm594_vm10  ;;  %vm603_vm15 = vweird.f32 %v566_v33  ;;  %p1015_p1 = pnand %p1014_p0, %p1180_p5  ;;  %p1020_p7 = por %p1019_p4, %p1018_p3 }
 0x230   : > { %v586_v39 = vsel %vm585_vm8, %v950_v13, %v582_v35  ;;  %v589_v40 = vmul.f32 %v952_v32, %v588_v36 }
 0x231   : > { %v608_v41 = vmul.f32 %v586_v39, %v1253_v46  ;;  %v637_v38 = vsel %vm628_vm9, %v623_v34, %v633_v37  ;;  %p1016_p2 = pneg %p1015_p1 }
 0x232   : > { %v590_v42 = vmul.f32 0.5, %v589_v40  ;;  %868 = vmatmul.msk.f32.vlgmr.msra.gmra.mxu2 %vm474_vm1, %v637_v38 }
 0x233   : > { %v616_v43 = vmul.f32 %v941_v20, %v608_v41  ;;  %p1021_p8 = pnand %p1020_p7, %p1016_p2 }
 0x234   : > { %v591_v44 = vsub.f32 1.5, %v590_v42 }
 0x235   : > { %v954_v45 = vpop.eup %953  ;;  %v624_v47 = vadd.f32 %v942_v24, %v616_v43 }
 0x236   : > { %v592_v48 = vmul.f32 %v952_v32, %v591_v44  ;;  %v598_v49 = vmul.f32 %v954_v45, %v566_v33  ;;  %vm604_vm14 = vweird.f32 %v954_v45 }
 0x237   : > { %vm629_vm13 = vcmp.ge.f32.partialorder %v624_v47, 0.0  ;;  %v634_v50 = vmul.f32 %v632_v31, %v624_v47  ;;  %vm605_vm0 = vmor %vm603_vm15, %vm604_vm14 }
 0x238   : > { %v596_v52 = vsel %vm595_vm12, %v952_v32, %v592_v48  ;;  %v599_v53 = vmul.f32 %v954_v45, %v598_v49 }
 0x239   : > { %v609_v54 = vmul.f32 %v596_v52, %v1259_v51  ;;  %v638_v46 = vsel %vm629_vm13, %v624_v47, %v634_v50 }
 0x23a   : > { %v600_v55 = vmul.f32 0.5, %v599_v53  ;;  %869 = vmatmul.msk.f32.gmra.mxu2 %vm474_vm1, %v638_v46 }
 0x23b   : > { %v617_v57 = vmul.f32 %v941_v20, %v609_v54 }
 0x23c   : > { %v601_v58 = vsub.f32 1.5, %v600_v55 }
 0x23d   : > { %v625_v59 = vadd.f32 %v942_v24, %v617_v57 }
 0x23e   : > { %v602_v60 = vmul.f32 %v954_v45, %v601_v58 }
 0x23f   : > { %vm630_vm2 = vcmp.ge.f32.partialorder %v625_v59, 0.0  ;;  %v635_v61 = vmul.f32 %v632_v31, %v625_v59 }
 0x240   : > { %v606_v62 = vsel %vm605_vm0, %v954_v45, %v602_v60 }
 0x241   : > { %v610_v63 = vmul.f32 %v606_v62, %v1265_v56  ;;  %v639_v0 = vsel %vm630_vm2, %v625_v59, %v635_v61  ;;  %v943_v56 = vld [vmem:[%s1358_s9] ss:$0 sm:$0xff] }
 0x242   : > { %870 = vmatmul.msk.f32.gmra.mxu2 %vm474_vm1, %v639_v0 }
 0x243   : > { %v618_v51 = vmul.f32 %v941_v20, %v610_v63 }
 0x245   : > { %v626_v1 = vadd.f32 %v942_v24, %v618_v51 }
 0x247   : > { %vm631_vm3 = vcmp.ge.f32.partialorder %v626_v1, 0.0  ;;  %v636_v2 = vmul.f32 %v632_v31, %v626_v1 }
 0x249   : > { %v640_v3 = vsel %vm631_vm3, %v626_v1, %v636_v2 }
 0x24a   : > { %871 = vmatmul.msk.f32.gmra.mxu2 %vm474_vm1, %v640_v3 }
 0x2b5   : > { %v678_v7 = vpop.f32.mrf.mxu2 }
 0x2b6   : > { %v679_v8 = vadd.f32 %v943_v56, %v678_v7 }
 0x2b8   : > { %v690_v9 = vadd.f32 %v679_v8, %v1225_v12  ;;  %v944_v12 = vld [vmem:[%s1360_s11] ss:$0 sm:$0xff] }
 0x2ba   : > { %872 = vmatmul.msk.f32.vlgmr.msra.gmra.mxu3 %vm474_vm1, %v690_v9 }
 0x2bd   : > { %v681_v10 = vpop.f32.mrf.mxu2 }
 0x2be   : > { %v682_v11 = vadd.f32 %v943_v56, %v681_v10 }
 0x2c0   : > { %v691_v13 = vadd.f32 %v682_v11, %v1229_v14 }
 0x2c2   : > { %873 = vmatmul.msk.f32.gmra.mxu3 %vm474_vm1, %v691_v13 }
 0x2c5   : > { %v684_v15 = vpop.f32.mrf.mxu2 }
 0x2c6   : > { %v685_v17 = vadd.f32 %v943_v56, %v684_v15 }
 0x2c8   : > { %v692_v19 = vadd.f32 %v685_v17, %v1233_v16 }
 0x2ca   : > { %874 = vmatmul.msk.f32.gmra.mxu3 %vm474_vm1, %v692_v19 }
 0x2cd   : > { %v687_v20 = vpop.f32.mrf.mxu2 }
 0x2ce   : > { %v688_v21 = vadd.f32 %v943_v56, %v687_v20 }
 0x2d0   : > { %v693_v22 = vadd.f32 %v688_v21, %v1237_v18 }
 0x2d2   : > { %875 = vmatmul.msk.f32.gmra.mxu3 %vm474_vm1, %v693_v22 }
 0x33d   : > { %v731_v14 = vpop.f32.mrf.mxu3 }
 0x33e   : > { %v732_v16 = vadd.f32 %v944_v12, %v731_v14 }
 0x340   : > { %vm744_vm4 = vcmp.ge.f32.partialorder %v732_v16, 0.0  ;;  %v749_v24 = vmul.f32 %v748_v23, %v732_v16 }
 0x342   : > { %v753_v25 = vsel %vm744_vm4, %v732_v16, %v749_v24 }
 0x343   : > { %757 = vst [vmem:[%s406_s15] sm:$0xff] %v753_v25 }
 0x345   : > { %v734_v18 = vpop.f32.mrf.mxu3 }
 0x346   : > { %v735_v26 = vadd.f32 %v944_v12, %v734_v18 }
 0x348   : > { %vm745_vm1 = vcmp.ge.f32.partialorder %v735_v26, 0.0  ;;  %v750_v27 = vmul.f32 %v748_v23, %v735_v26 }
 0x34a   : > { %v754_v28 = vsel %vm745_vm1, %v735_v26, %v750_v27 }
 0x34b   : > { %758 = vst [vmem:[%s406_s15 + $0x8] sm:$0xff] %v754_v28 }
 0x34d   : > { %v737_v29 = vpop.f32.mrf.mxu3 }
 0x34e   : > { %v738_v30 = vadd.f32 %v944_v12, %v737_v29 }
 0x350   : > { %vm746_vm5 = vcmp.ge.f32.partialorder %v738_v30, 0.0  ;;  %v751_v31 = vmul.f32 %v748_v23, %v738_v30 }
 0x352   : > { %v755_v32 = vsel %vm746_vm5, %v738_v30, %v751_v31 }
 0x353   : > { %759 = vst [vmem:[%s406_s15 + $0x10] sm:$0xff] %v755_v32 }
 0x355   : > { %v740_v33 = vpop.f32.mrf.mxu3 }
 0x356   : > { %v741_v34 = vadd.f32 %v944_v12, %v740_v33 }
 0x358   : > { %vm747_vm6 = vcmp.ge.f32.partialorder %v741_v34, 0.0  ;;  %v752_v35 = vmul.f32 %v748_v23, %v741_v34 }
 0x35a   : > { %v756_v36 = vsel %vm747_vm6, %v741_v34, %v752_v35 }
 0x35b   : > { %760 = vst [vmem:[%s406_s15 + $0x18] sm:$0xff] %v756_v36 }
 0x35c   : > { %1024 = shalt.err (!%p1021_p8)
}
 0x35d   : > { %s1072_s10 = smov 128   ;;  %s1073_s15 = smov 8  }
 0x35e   : > { %887 = dma.vmem_to_hbm [thread:$0]  (%p1180_p5), %s775_s23, 512, %s777_s24, %s762_s0, %s1072_s10, %s1072_s10, %s1073_s15  }
 0x35f PF: > { %p899_p9 = scmp.ge.s32.totalorder %s1065_s28, 2  ;;  %s791_s22 = sand.u32 1, %s1053_s25  }
 0x360   : > { %s792_s14 = scalar_lea.sflag [#allocation6], %s791_s22 }
 0x361   : > { %p894_p10 = pnand %p899_p9, %p1184_p6 }
 0x363   : > { %p895_p11 = pneg %p894_p10 }
 0x365   : > { %1048 = dma.done.wait (%p895_p11), %s792_s14, 512  }
 0x366   : > { %1050 = vsyncadd (%p895_p11), %s792_s14, 4294966784  ;;  %s1367_s29 = sld [smem:[#allocation11_spill]]  ;;  %p31_p12 = scmp.ge.s32.totalorder %s1167_s30, 4  }
 0x367   : > { %s1368_s25 = smov %s1057_s26  ;;  %s1369_s26 = smov %s1061_s27 }
 0x368   : > { %s1371_s28 = smov %s1167_s30  ;;  %33 = sbr.rel (!%p31_p12) target bundleno = 10 (0xa), region = 104 }
 0x36c   : > { %s1370_s27 = smov %s1367_s29 }
 0x36d   :  { %798 = vsyncpa [#allocation5], 1 }
 0x36e   :  { %800 = vsyncpa [#allocation5 + $0x1], 1 }
 0x36f   :  { %801 = vsyncpa [#allocation6], 1 }
 0x370   :  { %803 = vsyncpa [#allocation6 + $0x1], 1 }

</bundles_post_ra>
